<compile_context>
chip_gen: v6e
topology: v6e:2x2x1
jax: 0.10.0
libtpu: 0.0.40
codegen_flags: <defaults>
</compile_context>

<pallas_src>
import jax
import jax.numpy as jnp
from jax import lax
from jax.experimental import pallas as pl
from jax.experimental.pallas import tpu as pltpu


# ----------------------------------------------------------------------------
# Kernels
# ----------------------------------------------------------------------------


def _make_resident_kernel(n_parts, precision):
    """Gather T rows from VMEM-resident table part(s) via one-hot MXU matmul.

    Kernel args:
      ids_ref:   VMEM (T, 1) int32 token ids for this block.
      part refs: n_parts x VMEM (V, D) table parts (resident across the grid).
      out_ref:   VMEM (T, D) output tile.
    """

    def kernel(ids_ref, *refs):
        part_refs = refs[:n_parts]
        out_ref = refs[n_parts]
        T = out_ref.shape[0]
        V = part_refs[0].shape[0]

        ids_blk = ids_ref[...]  # (T, 1) int32
        col = lax.broadcasted_iota(jnp.int32, (T, V), 1)
        # Single broadcast compare -> (T, V) one-hot (no unrolled selects).
        one_hot = (col == ids_blk).astype(part_refs[0].dtype)

        acc = jnp.dot(
            one_hot,
            part_refs[0][...],
            preferred_element_type=jnp.float32,
            precision=precision,
        )
        for p_ref in part_refs[1:]:
            acc = acc + jnp.dot(
                one_hot,
                p_ref[...],
                preferred_element_type=jnp.float32,
                precision=precision,
            )
        out_ref[...] = acc.astype(out_ref.dtype)

    return kernel


def _embed_dma_gather_kernel(ids_ref, table_hbm_ref, out_ref, copy_sems):
    """Gather T rows straight from the HBM table with T concurrent DMAs.

    ids_ref:       SMEM (chunk_len,) int32 scalar-prefetch token ids.
    table_hbm_ref: HBM (V, D) embedding table (memory_space=pl.ANY).
    out_ref:       VMEM (T, D) output tile — rows are DMA'd directly here.
    copy_sems:     DMA semaphores, shape (nsem,), round-robined over rows.
    """
    i = pl.program_id(0)
    T = out_ref.shape[0]
    nsem = copy_sems.shape[0]
    base = i * T

    # Issue all T row fetches before waiting — keeps T DMAs in flight and the
    # rows land directly in the pipelined output tile (no staging copy).
    copies = []
    for t in range(T):
        row = ids_ref[base + t]
        cp = pltpu.make_async_copy(
            table_hbm_ref.at[pl.ds(row, 1), :],
            out_ref.at[pl.ds(t, 1), :],
            copy_sems.at[t % nsem],
        )
        cp.start()
        copies.append(cp)
    # Wait using the original descriptors (equal-sized rows per semaphore).
    for cp in copies:
        cp.wait()


# ----------------------------------------------------------------------------
# Host-side helpers
# ----------------------------------------------------------------------------

_SUBLANE = {4: 8, 2: 16, 1: 32}
_ONEHOT_BUDGET_ELEMS = 1 << 20  # cap T*V so (T,V) intermediates stay ~<=12 MiB


def _vmem_capacity_bytes():
    try:
        info = pltpu.get_tpu_info()
        cap = getattr(info, "vmem_capacity_bytes", None)
        if cap:
            return int(cap)
    except Exception:
        pass
    return 64 << 20  # Conservative: v7x physical VMEM per TensorCore.


def _round_up(x, m):
    return ((x + m - 1) // m) * m


def _pick_block_tokens(n_tokens, sub, target, onehot_budget_elems=None, vocab=None):
    t = int(target)
    if onehot_budget_elems and vocab:
        while t > sub and t * vocab > onehot_budget_elems:
            t //= 2
    t = max(sub, t)
    t = min(t, _round_up(n_tokens, sub))
    t = max(sub, (t // sub) * sub)
    return t


# ----------------------------------------------------------------------------
# Host-side wrapper
# ----------------------------------------------------------------------------


def embedder_forward(
    ids,
    table,
    *,
    block_tokens=None,
    force_dma_gather=False,
    max_resident_vocab=4096,
    resident_exact=False,
):
    """Equivalent of torch.nn.Embedding(vocab, d_model)(ids)."""
    ids = jnp.asarray(ids)
    table = jnp.asarray(table)
    V, D = int(table.shape[0]), int(table.shape[1])
    lead_shape = ids.shape

    itemsize = int(jnp.dtype(table.dtype).itemsize)
    sub = _SUBLANE.get(itemsize, 8)

    flat_ids = ids.reshape(-1).astype(jnp.int32)
    # torch.nn.Embedding raises on out-of-range ids; here we clamp so an
    # invalid id can never DMA a bogus HBM row (documented deviation).
    flat_ids = jnp.clip(flat_ids, 0, V - 1)
    N = int(flat_ids.shape[0])

    table_bytes = V * D * itemsize
    vmem_cap = _vmem_capacity_bytes()

    # --- choose path -------------------------------------------------------
    if block_tokens is None:
        T_res = _pick_block_tokens(N, sub, 256, _ONEHOT_BUDGET_ELEMS, V)
        T_dma = _pick_block_tokens(N, sub, 128)
    else:
        T_user = max(sub, _round_up(int(block_tokens), sub))
        T_res = T_dma = min(T_user, _round_up(N, sub))

    # Resident VMEM need: double-buffered table parts + one-hot/iota/mask
    # intermediates + double-buffered ids & output tiles + acc + slack.
    resident_need = (
        2 * table_bytes
        + 3 * T_res * V * 4
        + 2 * T_res * D * itemsize
        + T_res * D * 4
        + 2 * T_res * 128 * 4
        + (8 << 20)
    )
    # Gate on both VMEM footprint and compute cost (one-hot does V*D MACs per
    # token, so large vocabs are better served by the HBM row gather).
    use_resident = (
        (not force_dma_gather)
        and V <= max_resident_vocab
        and resident_need <= (vmem_cap * 3) // 4
    )

    if use_resident:
        T = T_res
        G = pl.cdiv(N, T)
        Npad = G * T
        if Npad != N:
            flat_ids = jnp.concatenate(
                [flat_ids, jnp.zeros((Npad - N,), jnp.int32)]
            )
        ids_2d = flat_ids.reshape(Npad, 1)

        # Table parts: split f32 tables into bf16 hi/lo halves so the one-hot
        # gather is two cheap DEFAULT-precision bf16 MXU matmuls instead of a
        # 6-pass HIGHEST f32 matmul.  bf16 tables gather exactly in one pass.
        if table.dtype == jnp.float32 and not resident_exact:
            hi = table.astype(jnp.bfloat16)
            lo = (table - hi.astype(jnp.float32)).astype(jnp.bfloat16)
            parts = (hi, lo)
            precision = None
        elif table.dtype == jnp.float32:
            parts = (table,)
            precision = lax.Precision.HIGHEST  # bit-exact row selection
        else:
            parts = (table,)
            precision = None

        vmem_limit = int(min(vmem_cap, max(32 << 20, resident_need)))

        in_specs = [pl.BlockSpec((T, 1), lambda i: (i, 0))]
        in_specs += [
            # Full table part, constant block index -> fetched once, resident
            # in VMEM across the whole grid.
            pl.BlockSpec((V, D), lambda i: (0, 0))
            for _ in parts
        ]

        out_flat = pl.pallas_call(
            _make_resident_kernel(len(parts), precision),
            out_shape=jax.ShapeDtypeStruct((Npad, D), table.dtype),
            grid_spec=pltpu.PrefetchScalarGridSpec(
                num_scalar_prefetch=0,
                grid=(G,),
                in_specs=in_specs,
                out_specs=pl.BlockSpec((T, D), lambda i: (i, 0)),
            ),
            compiler_params=pltpu.CompilerParams(
                dimension_semantics=("parallel",),
                vmem_limit_bytes=vmem_limit,
            ),
        )(ids_2d, *parts)
    else:
        T = T_dma
        G = pl.cdiv(N, T)
        Npad = G * T
        if Npad != N:
            flat_ids = jnp.concatenate(
                [flat_ids, jnp.zeros((Npad - N,), jnp.int32)]
            )

        nsem = min(T, 32)
        vmem_limit = int(
            min(vmem_cap, max(32 << 20, 4 * T * D * itemsize + (8 << 20)))
        )
        # Chunk long token streams so the scalar-prefetched SMEM ids array
        # (pads to next_pow2(4*chunk_len) bytes) stays small.
        max_chunk = max(T, ((1 << 15) // T) * T)

        chunks = []
        for start in range(0, Npad, max_chunk):
            ids_c = flat_ids[start : start + max_chunk]
            n_c = int(ids_c.shape[0])
            out_c = pl.pallas_call(
                _embed_dma_gather_kernel,
                out_shape=jax.ShapeDtypeStruct((n_c, D), table.dtype),
                grid_spec=pltpu.PrefetchScalarGridSpec(
                    num_scalar_prefetch=1,
                    grid=(n_c // T,),
                    in_specs=[
                        # Keep the (possibly huge) table in HBM; gather manually.
                        pl.BlockSpec(memory_space=pl.ANY),
                    ],
                    out_specs=pl.BlockSpec((T, D), lambda i, ids_ref: (i, 0)),
                    scratch_shapes=[pltpu.SemaphoreType.DMA((nsem,))],
                ),
                compiler_params=pltpu.CompilerParams(
                    dimension_semantics=("parallel",),
                    vmem_limit_bytes=vmem_limit,
                ),
            )(ids_c, table)
            chunks.append(out_c)
        out_flat = chunks[0] if len(chunks) == 1 else jnp.concatenate(chunks, 0)

    return out_flat[:N].reshape(*lead_shape, D)


# ----------------------------------------------------------------------------
# Test
# ----------------------------------------------------------------------------

if __name__ == "__main__":
    vocab_size = 64
    d_model = 128
    batch, seq = 2, 8

    key = jax.random.PRNGKey(0)
    k_table, k_ids, k_ids2 = jax.random.split(key, 3)

    # nn.Embedding default init: N(0, 1)
    embed_table = jax.random.normal(
        k_table, (vocab_size, d_model), dtype=jnp.float32
    )
    token_ids = jax.random.randint(
        k_ids, (batch, seq), 0, vocab_size, dtype=jnp.int32
    )
    ref = jnp.take(embed_table, token_ids, axis=0)

    # 1) Resident path, default hi/lo bf16 split (max rel. err ~2^-16).
    out = jax.block_until_ready(embedder_forward(token_ids, embed_table))
    assert out.shape == (batch, seq, d_model)
    assert out.dtype == embed_table.dtype
    assert jnp.allclose(out, ref, rtol=1e-4, atol=1e-6), (
        "resident split-bf16 path mismatch vs reference"
    )

    # 2) Resident path, exact f32 HIGHEST one-hot matmul.
    out_exact = jax.block_until_ready(
        embedder_forward(token_ids, embed_table, resident_exact=True)
    )
    assert jnp.allclose(out_exact, ref), "resident exact path mismatch"

    # 3) HBM DMA-gather path (auto-selected for large vocab/tables) — exact.
    out_dma = jax.block_until_ready(
        embedder_forward(token_ids, embed_table, force_dma_gather=True)
    )
    assert bool(jnp.array_equal(out_dma, ref)), "dma-gather path mismatch"

    # 4) Token-count padding (N not a multiple of the block size).
    token_ids2 = jax.random.randint(
        k_ids2, (2, 25), 0, vocab_size, dtype=jnp.int32
    )
    out2 = jax.block_until_ready(embedder_forward(token_ids2, embed_table))
    ref2 = jnp.take(embed_table, token_ids2, axis=0)
    assert out2.shape == (2, 25, d_model)
    assert jnp.allclose(out2, ref2, rtol=1e-4, atol=1e-6), (
        "padded multi-block path mismatch"
    )

    print("KERNEL_OK")
</pallas_src>

<mosaic_0001>
module attributes {stable_mosaic.version = 11 : i64} {
  func.func @kernel(%arg0: i32, %arg1: memref<16x1xi32, #tpu.memory_space<vmem>>, %arg2: memref<64x128xbf16, #tpu.memory_space<vmem>>, %arg3: memref<64x128xbf16, #tpu.memory_space<vmem>>, %arg4: memref<16x128xf32, #tpu.memory_space<vmem>>) attributes {dimension_semantics = [#tpu.dimension_semantics<parallel>], iteration_bounds = array<i64: 1>, scalar_prefetch = 0 : i64, scratch_operands = 0 : i64, tpu.core_type = #tpu.core_type<tc>, window_params = [{transform_indices = @transform_0, window_bounds = array<i64: 16, 1>}, {pipeline_mode = #tpu.pipeline_mode<synchronous>, transform_indices = @transform_1, window_bounds = array<i64: 64, 128>}, {pipeline_mode = #tpu.pipeline_mode<synchronous>, transform_indices = @transform_2, window_bounds = array<i64: 64, 128>}, {transform_indices = @transform_3, window_bounds = array<i64: 16, 128>}]} {
    %c0 = arith.constant 0 : index
    %c0_0 = arith.constant 0 : index
    %0 = vector.load %arg1[%c0, %c0_0] : memref<16x1xi32, #tpu.memory_space<vmem>>, vector<16x1xi32>
    %1 = tpu.iota {dimensions = array<i32: 1>} : vector<16x64xi32>
    %2 = vector.broadcast %0 : vector<16x1xi32> to vector<16x64xi32>
    %3 = arith.cmpi eq, %1, %2 : vector<16x64xi32>
    %4 = arith.extui %3 : vector<16x64xi1> to vector<16x64xi32>
    %5 = arith.sitofp %4 : vector<16x64xi32> to vector<16x64xf32>
    %6 = arith.truncf %5 : vector<16x64xf32> to vector<16x64xbf16>
    %c0_1 = arith.constant 0 : index
    %c0_2 = arith.constant 0 : index
    %7 = vector.load %arg2[%c0_1, %c0_2] : memref<64x128xbf16, #tpu.memory_space<vmem>>, vector<64x128xbf16>
    %cst = arith.constant dense<0.000000e+00> : vector<16x128xf32>
    %8 = tpu.matmul %6, %7, %cst {dimension_numbers = #tpu.dot_dimension_numbers<[1], [0], [0], [1], [0, 0, 1, 1], [], []>} : vector<16x64xbf16>, vector<64x128xbf16>, vector<16x128xf32> -> vector<16x128xf32>
    %c0_3 = arith.constant 0 : index
    %c0_4 = arith.constant 0 : index
    %9 = vector.load %arg3[%c0_3, %c0_4] : memref<64x128xbf16, #tpu.memory_space<vmem>>, vector<64x128xbf16>
    %cst_5 = arith.constant dense<0.000000e+00> : vector<16x128xf32>
    %10 = tpu.matmul %6, %9, %cst_5 {dimension_numbers = #tpu.dot_dimension_numbers<[1], [0], [0], [1], [0, 0, 1, 1], [], []>} : vector<16x64xbf16>, vector<64x128xbf16>, vector<16x128xf32> -> vector<16x128xf32>
    %11 = arith.addf %8, %10 : vector<16x128xf32>
    %c0_6 = arith.constant 0 : index
    %c0_7 = arith.constant 0 : index
    %12 = vector.load %arg4[%c0_6, %c0_7] : memref<16x128xf32, #tpu.memory_space<vmem>>, vector<16x128xf32>
    tpu.vector_store %arg4[%c0_6, %c0_7], %11 {strides = array<i32>} : memref<16x128xf32, #tpu.memory_space<vmem>>, vector<16x128xf32>,
    return
  }
  func.func @transform_0(%arg0: i32) -> (i32, i32) {
    %c0_i32 = arith.constant 0 : i32
    %c0_i32_0 = arith.constant 0 : i32
    return %arg0, %c0_i32 : i32, i32
  }
  func.func @transform_1(%arg0: i32) -> (i32, i32) {
    %c0_i32 = arith.constant 0 : i32
    %c0_i32_0 = arith.constant 0 : i32
    %c0_i32_1 = arith.constant 0 : i32
    return %c0_i32, %c0_i32_0 : i32, i32
  }
  func.func @transform_2(%arg0: i32) -> (i32, i32) {
    %c0_i32 = arith.constant 0 : i32
    %c0_i32_0 = arith.constant 0 : i32
    %c0_i32_1 = arith.constant 0 : i32
    return %c0_i32, %c0_i32_0 : i32, i32
  }
  func.func @transform_3(%arg0: i32) -> (i32, i32) {
    %c0_i32 = arith.constant 0 : i32
    %c0_i32_0 = arith.constant 0 : i32
    return %arg0, %c0_i32 : i32, i32
  }
}

</mosaic_0001>

<bundles_post_ra>
// kernel: tpu_custom_call.1
= control target key start
LH: loop header
LB: loop body
LE: loop exit
PB: predicated region body
PF: predicated region fallthrough
CT: control target
= control target key end

     0   :  { %8 = vsyncpa [#allocation3], 0  ;;  %s407_s0 = inlined_call_operand.vmem [shape: s32[16,1], index: 0, kind: input, shape index: {}]   ;;  %s408_s1 = inlined_call_operand.hbm [shape: bf16[64,128], index: 1, kind: input, shape index: {}]   ;;  %s409_s2 = inlined_call_operand.hbm [shape: bf16[64,128], index: 2, kind: input, shape index: {}]   ;;  %s410_s3 = inlined_call_operand.hbm [shape: f32[16,128], index: 3, kind: output, shape index: {}]  }
   0x1   :  { %9 = vsyncpa [#allocation6], 0 }
   0x2   :  { %10 = vsyncpa [#allocation4], 0  ;;  %s362_s12 = smov [#allocation2]  }
   0x3   :  { %s18_s13 = sshll.u32 %s362_s12, 4  ;;  %s19_s13 = int_to_ptr.vmem [resolvable:$true] %s18_s13 }
   0x4   :  { %s304_s14 = scalar_lea.vmem %s19_s13, 512  ;;  %p309_p1 = scmp.lt.s32.totalorder %s19_s13, %s19_s13 }
   0x5   :  { %p305_p0 = scmp.ne.s32.totalorder %s19_s13, %s304_s14  ;;  %p310_p2 = scmp.lt.s32.totalorder %s304_s14, %s304_s14 }
   0x7   :  { %p311_p3 = por %p310_p2, %p309_p1 }
   0x9   :  { %p312_p4 = pnand %p311_p3, %p305_p0 }
   0xb   :  { %315 = shalt.err (!%p312_p4)
}
   0xc   :  { %s363_s15 = smov 64   ;;  %s364_s16 = smov 4  }
   0xd   :  { %24 = dma.hbm_to_vmem [thread:$0]  %s408_s1, 512, %s19_s13, [#allocation3], %s363_s15, %s363_s15, %s364_s16  }
   0xe   :  { %s365_s19 = smov [#allocation5]  }
   0xf   :  { %s30_s20 = sshll.u32 %s365_s19, 4  ;;  %s31_s20 = int_to_ptr.vmem [resolvable:$true] %s30_s20 }
  0x10   :  { %s324_s21 = scalar_lea.vmem %s31_s20, 512  ;;  %p329_p6 = scmp.lt.s32.totalorder %s31_s20, %s31_s20 }
  0x11   :  { %p325_p5 = scmp.ne.s32.totalorder %s31_s20, %s324_s21  ;;  %p330_p7 = scmp.lt.s32.totalorder %s324_s21, %s324_s21 }
  0x13   :  { %p331_p8 = por %p330_p7, %p329_p6 }
  0x15   :  { %p332_p9 = pnand %p331_p8, %p325_p5 }
  0x17   :  { %335 = shalt.err (!%p332_p9)
}
  0x18   :  { %36 = dma.hbm_to_vmem [thread:$0]  %s409_s2, 512, %s31_s20, [#allocation6], %s363_s15, %s363_s15, %s364_s16  }
  0x19   :  { %356 = dma.done.wait [#allocation3], 512  }
  0x1a   :  { %357 = vsyncadd [#allocation3], 4294966784 }
  0x1b   :  { %358 = dma.done.wait [#allocation6], 512  }
  0x1c   :  { %359 = vsyncadd [#allocation6], 4294966784  ;;  %v366_v0 = vmov 0   ;;  %v367_v1 = vmov 0.0   ;;  %v44_v2 = vld [vmem:[%s407_s0] sm:$0xff]  ;;  %v45_v3 = vld [vmem:[%s407_s0 + $0x8] sm:$0xff]  ;;  %v46_v12 = vlaneseq }
  0x1d   :  { %287 = vset.pattern.permute.xlu0 %v366_v0  ;;  %253 = vmatprep.subr.bf16.mxu0 %v367_v1  ;;  %v288_v4 = vld [vmem:[#allocation5 + $0x18] sm:$0xff]   ;;  %v290_v6 = vld [vmem:[#allocation5 + $0x10] sm:$0xff]   ;;  %vm368_vm0 = vmmov 0   ;;  %v292_v8 = vld [vmem:[#allocation5 + $0x8] sm:$0xff]   ;;  %vm101_vm3 = vcmask 523264   ;;  %s369_s0 = smov [#allocation7]  }
  0x1e   :  { %265 = vmatprep.subr.bf16.mxu1 %v367_v1  ;;  %49 = vperm.xlu0 %287, %v44_v2   ;;  %v289_v5 = vld [vmem:[#allocation2 + $0x18] sm:$0xff]   ;;  %v291_v7 = vld [vmem:[#allocation2 + $0x10] sm:$0xff]   ;;  %v293_v9 = vld [vmem:[#allocation2 + $0x8] sm:$0xff]   ;;  %v47_v13 = vand.u32 127, %v46_v12  ;;  %s218_s2 = sshll.u32 %s369_s0, 4  ;;  %s219_s2 = int_to_ptr.vmem [resolvable:$true] %s218_s2 }
  0x1f   :  { %254 = vmatpush3.bf16.msra.mxu0 %v288_v4  ;;  %266 = vmatpush3.bf16.msra.mxu1 %v289_v5  ;;  %v294_v10 = vld [vmem:[#allocation5] sm:$0xff]   ;;  %s336_s27 = scalar_lea.vmem %s219_s2, 256  ;;  %p341_p11 = scmp.lt.s32.totalorder %s219_s2, %s219_s2 }
  0x20   :  { %255 = vmatprep.subr.bf16.mxu0 %v367_v1  ;;  %267 = vmatprep.subr.bf16.mxu1 %v367_v1  ;;  %v295_v11 = vld [vmem:[#allocation2] sm:$0xff]   ;;  %p337_p10 = scmp.ne.s32.totalorder %s219_s2, %s336_s27  ;;  %p342_p12 = scmp.lt.s32.totalorder %s336_s27, %s336_s27 }
  0x21   :  { %261 = vmatprep.mubr.msk.bf16.mxu0 %vm368_vm0, %v367_v1  ;;  %273 = vmatprep.mubr.msk.bf16.mxu1 %vm368_vm0, %v367_v1 }
  0x22   :  { %52 = vperm.xlu0 %287, %v45_v3   ;;  %p343_p13 = por %p342_p12, %p341_p11 }
  0x23   :  { %256 = vmatpush3.bf16.msra.mxu0 %v290_v6  ;;  %268 = vmatpush3.bf16.msra.mxu1 %v291_v7 }
  0x24   :  { %257 = vmatprep.subr.bf16.mxu0 %v367_v1  ;;  %269 = vmatprep.subr.bf16.mxu1 %v367_v1  ;;  %p344_p0 = pnand %p343_p13, %p337_p10 }
  0x27   :  { %258 = vmatpush3.bf16.msra.mxu0 %v292_v8  ;;  %270 = vmatpush3.bf16.msra.mxu1 %v293_v9 }
  0x28   :  { %259 = vmatprep.subr.bf16.mxu0 %v367_v1  ;;  %271 = vmatprep.subr.bf16.mxu1 %v367_v1 }
  0x2b   :  { %260 = vmatpush3.bf16.msra.mxu0 %v294_v10  ;;  %272 = vmatpush3.bf16.msra.mxu1 %v295_v11 }
  0x99   :  { %v50_v14 = vpop.permute.xlu0 %49 }
  0x9a   :  { %vm54_vm1 = vcmp.eq.s32.totalorder %v47_v13, %v50_v14 }
  0x9b   :  { %v231_v16 = vsel %vm54_vm1, 1.0, %v367_v1 }
  0x9d   :  { %v53_v15 = vpop.permute.xlu0 %52 }
  0x9e   :  { %vm55_vm2 = vcmp.eq.s32.totalorder %v47_v13, %v53_v15 }
  0x9f   :  { %v232_v17 = vsel %vm55_vm2, 1.0, %v367_v1 }
  0xa0   :  { %v60_v18 = vpack.c.bf16 %v232_v17, %v231_v16 }
  0xa2   :  { %262 = vmatmul.mubr.msk.bf16.vlgmr.msra.gmra.mxu0 %vm101_vm3, %v60_v18  ;;  %274 = vmatmul.mubr.msk.bf16.vlgmr.msra.gmra.mxu1 %vm101_vm3, %v60_v18 }
 0x162   :  { %v139_v19 = vpop.f32.mrf.mxu0  ;;  %v204_v20 = vpop.f32.mrf.mxu1 }
 0x163   :  { %v205_v21 = vadd.f32 %v204_v20, %v139_v19 }
 0x164   :  { %v263_v22 = vpop.f32.mrf.mxu0  ;;  %v275_v23 = vpop.f32.mrf.mxu1 }
 0x165   :  { %211 = vst [vmem:[#allocation7] sm:$0xff] %v205_v21 }
 0x166   :  { %v142_v24 = vpop.f32.mrf.mxu0  ;;  %v207_v25 = vpop.f32.mrf.mxu1 }
 0x167   :  { %v208_v26 = vadd.f32 %v207_v25, %v142_v24 }
 0x168   :  { %v264_v27 = vpop.f32.mrf.mxu0  ;;  %v276_v28 = vpop.f32.mrf.mxu1 }
 0x169   :  { %212 = vst [vmem:[#allocation7 + $0x8] sm:$0xff] %v208_v26 }
 0x16a   :  { %347 = shalt.err (!%p344_p0)
}
 0x16b   :  { %s370_s28 = smov 128   ;;  %s371_s29 = smov 8  }
 0x16c   :  { %224 = dma.vmem_to_hbm [thread:$0]  %s219_s2, 256, %s410_s3, [#allocation4], %s370_s28, %s370_s28, %s371_s29  }
 0x16d   :  { %360 = dma.done.wait [#allocation4], 256  }
 0x16e   :  { %361 = vsyncadd [#allocation4], 4294967040 }
 0x16f   :  { %228 = vsyncpa [#allocation3], 1 }
 0x170   :  { %229 = vsyncpa [#allocation6], 1 }
 0x171   :  { %230 = vsyncpa [#allocation4], 1 }

</bundles_post_ra>
